<compile_context>
chip_gen: v7x
topology: tpu7x:2x2x1
jax: 0.10.0
libtpu: 0.0.40
codegen_flags: <defaults>
</compile_context>

<pallas_src>
import functools

import jax
import jax.numpy as jnp
import numpy as np
from jax.experimental import pallas as pl
from jax.experimental.pallas import tpu as pltpu


# (name, cin, cout, kernel, stride, has_bn, activation)
ENC_CFG = [
    ("e1", 3, 16, 4, 2, False, "leaky_relu"),
    ("e2", 16, 64, 3, 2, True, "leaky_relu"),
    ("e3", 64, 128, 3, 2, True, "leaky_relu"),
    ("e4", 128, 256, 3, 2, True, "leaky_relu"),
    ("e5", 256, 512, 3, 2, True, "leaky_relu"),
    ("e6", 512, 512, 3, 2, True, "leaky_relu"),
    ("e7", 512, 512, 3, 1, False, "leaky_relu"),
]
DEC_CFG = [
    ("d1", 512, 512, 3, 1, True, "relu"),
    ("d2", 512, 512, 3, 2, True, "relu"),
    ("d3", 512, 256, 3, 2, True, "relu"),
    ("d4", 256, 128, 3, 2, True, "relu"),
    ("d5", 128, 64, 3, 2, True, "relu"),
    ("d6", 64, 16, 3, 2, True, "relu"),
    ("d7", 16, 3, 4, 2, False, "sigmoid"),
]


def _round_up(x, m):
    return -(-x // m) * m


# ----------------------------------------------------------------------------
# Pallas kernel: one grid step = one output tile of a full-K GEMM fused with
# the folded (bias + BatchNorm) affine and the layer activation.
#   a_ref  : [TM, K]  bf16  im2col patches tile
#   w_ref  : [K,  TN] bf16  weight tile
#   ss_ref : [2,  TN] f32   row0 = bn_scale, row1 = bias*bn_scale + bn_shift
#   o_ref  : [TM, TN] bf16 (intermediate layers) / f32 (final layer)
# ----------------------------------------------------------------------------
def _gemm_bn_act_kernel(a_ref, w_ref, ss_ref, o_ref, *, act):
    acc = jnp.dot(a_ref[...], w_ref[...], preferred_element_type=jnp.float32)
    y = acc * ss_ref[0:1, :] + ss_ref[1:2, :]
    if act == "leaky_relu":
        y = jnp.where(y > 0, y, 0.01 * y)          # F.leaky_relu default slope
    elif act == "relu":
        y = jnp.maximum(y, 0.0)
    elif act == "sigmoid":
        z = jnp.exp(-jnp.abs(y))                   # overflow-free sigmoid
        y = jnp.where(y >= 0, 1.0 / (1.0 + z), z / (1.0 + z))
    o_ref[...] = y.astype(o_ref.dtype)


def _choose_tiles(m, k, n):
    """Pick (TM, TN). TN = 128 when possible (v5e MXU granularity + more
    pipeline/grid steps); TM from a K-dependent tier; guarantee >= 2 grid
    steps (v7x has 2 TensorCores) whenever M is large enough to split."""
    tn = 128 if (n >= 128 and n % 128 == 0) else n
    if k <= 128:
        tier = 4096
    elif k <= 320:
        tier = 2048
    elif k <= 1280:
        tier = 1024
    else:
        tier = 512
    tm = m if m <= tier else tier
    if (-(-m // tm)) * (n // tn) < 2 and m > 16:
        tm = max(16, _round_up((m + 1) // 2, 16))
    return tm, tn


def fused_gemm_bn_act(patches, w_mat, ss, act, out_dtype=jnp.bfloat16):
    """patches [M,K] bf16, w_mat [K,N] bf16, ss [2,N] f32 -> [M,N] out_dtype."""
    m, k = patches.shape
    _, n = w_mat.shape
    tm, tn = _choose_tiles(m, k, n)
    mp = _round_up(m, tm)
    if mp != m:
        # TODO(synk): fold this small M pad into patch construction.
        patches = jnp.pad(patches, ((0, mp - m), (0, 0)))

    out = pl.pallas_call(
        functools.partial(_gemm_bn_act_kernel, act=act),
        out_shape=jax.ShapeDtypeStruct((mp, n), out_dtype),
        grid_spec=pltpu.PrefetchScalarGridSpec(
            num_scalar_prefetch=0,
            grid=(mp // tm, n // tn),
            in_specs=[
                pl.BlockSpec((tm, k), lambda i, j: (i, 0)),
                pl.BlockSpec((k, tn), lambda i, j: (0, j)),
                pl.BlockSpec((2, tn), lambda i, j: (0, j)),
            ],
            out_specs=pl.BlockSpec((tm, tn), lambda i, j: (i, j)),
        ),
        compiler_params=pltpu.CompilerParams(
            dimension_semantics=("parallel", "parallel"),
            vmem_limit_bytes=32 * 1024 * 1024),
    )(patches, w_mat, ss)
    return out[:m] if mp != m else out


# ----------------------------------------------------------------------------
# im2col glue (plain JAX, bf16) + layer wrappers
# ----------------------------------------------------------------------------
def _im2col(x, kh, kw, stride):
    """x [B,H,W,C] -> patches [B*Ho*Wo, kh*kw*C]; column order (dh, dw, c)."""
    b, h, w, c = x.shape
    ho = (h - kh) // stride + 1
    wo = (w - kw) // stride + 1
    cols = []
    for i in range(kh):
        for j in range(kw):
            cols.append(x[:, i:i + (ho - 1) * stride + 1:stride,
                          j:j + (wo - 1) * stride + 1:stride, :])
    patches = jnp.stack(cols, axis=3)              # [B, Ho, Wo, kh*kw, C]
    return patches.reshape(b * ho * wo, kh * kw * c), (b, ho, wo)


def conv_forward(x, w_mat, ss, k, stride, act):
    """nn.Conv2d (no padding) + folded BN + activation, NHWC, bf16 out."""
    xb = x.astype(jnp.bfloat16)
    patches, (b, ho, wo) = _im2col(xb, k, k, stride)
    out = fused_gemm_bn_act(patches, w_mat, ss, act, out_dtype=jnp.bfloat16)
    return out.reshape(b, ho, wo, -1)


def convT_forward(x, w_mat, ss, k, stride, cout, act, out_dtype):
    """nn.ConvTranspose2d (no padding) via packed sub-pixel phases:
    ONE stride-1 patch matrix shared by all s*s phases, ONE GEMM whose N dim
    is (phase, cout), then a single depth-to-space reshape + slice."""
    b, h, w, _ = x.shape
    nq = -(-k // stride)                            # ceil(k / stride)
    hout = (h - 1) * stride + k
    wout = (w - 1) * stride + k
    xb = x.astype(jnp.bfloat16)
    xp = jnp.pad(xb, ((0, 0), (nq - 1, nq - 1), (nq - 1, nq - 1), (0, 0)))
    patches, (_, ah, aw) = _im2col(xp, nq, nq, 1)   # ah = h + nq - 1
    y = fused_gemm_bn_act(patches, w_mat, ss, act, out_dtype=out_dtype)
    y = y.reshape(b, ah, aw, stride, stride, cout)
    y = jnp.transpose(y, (0, 1, 3, 2, 4, 5)).reshape(
        b, stride * ah, stride * aw, cout)
    return y[:, :hout, :wout, :]


def _pack_convT_weight(w, k, s):
    """w [Cin,Cout,k,k] (PyTorch ConvTranspose2d layout) -> packed phase GEMM
    matrix [nq*nq*Cin, s*s*Cout] (rows ordered (dh, dw, cin) to match _im2col
    columns; cols ordered (ph, pw, cout)).  Missing taps are zero-padded so
    every phase shares the same (nq x nq) patch geometry."""
    cin, cout = w.shape[0], w.shape[1]
    w_t = jnp.transpose(w, (2, 3, 0, 1))            # [k, k, Cin, Cout]
    nq = -(-k // s)
    zero = jnp.zeros((cin, cout), w_t.dtype)
    row_blocks = []
    for dh in range(nq):
        for dw in range(nq):
            phase_blocks = []
            for ph in range(s):
                th = ph + s * (nq - 1 - dh)         # reversed taps = correlation
                for pw in range(s):
                    tw = pw + s * (nq - 1 - dw)
                    ok = (th < k) and (tw < k)
                    phase_blocks.append(w_t[th, tw] if ok else zero)
            blk = jnp.stack(phase_blocks, axis=1)   # [Cin, s*s, Cout]
            row_blocks.append(blk.reshape(cin, s * s * cout))
    return jnp.concatenate(row_blocks, axis=0).astype(jnp.bfloat16)


# ----------------------------------------------------------------------------
# Deterministic parameter initialization (PyTorch layouts) + one-time prep
# ----------------------------------------------------------------------------
def init_params(seed=0):
    keys = iter(jax.random.split(jax.random.PRNGKey(seed), 128))

    def bn(c, eps=1e-5):
        gamma = 1.0 + 0.1 * jax.random.normal(next(keys), (c,), jnp.float32)
        beta = 0.1 * jax.random.normal(next(keys), (c,), jnp.float32)
        rmean = 0.1 * jax.random.normal(next(keys), (c,), jnp.float32)
        rvar = 0.5 + jax.random.uniform(next(keys), (c,), jnp.float32)
        scale = gamma / jnp.sqrt(rvar + eps)
        shift = beta - rmean * scale
        return {"scale": scale, "shift": shift}

    p = {}
    for name, cin, cout, k, _s, has_bn, _a in ENC_CFG:
        w = jax.random.normal(next(keys), (cout, cin, k, k),
                              jnp.float32) / jnp.sqrt(cin * k * k)
        b = 0.01 * jax.random.normal(next(keys), (cout,), jnp.float32)
        p[name] = {"w": w, "b": b}
        if has_bn:
            p[name + "_bn"] = bn(cout)
    for name, cin, cout, k, _s, has_bn, _a in DEC_CFG:
        w = jax.random.normal(next(keys), (cin, cout, k, k),
                              jnp.float32) / jnp.sqrt(cout * k * k)
        b = 0.01 * jax.random.normal(next(keys), (cout,), jnp.float32)
        p[name] = {"w": w, "b": b}
        if has_bn:
            p[name + "_bn"] = bn(cout)
    return p


def prepare_params(p):
    """GEMM-ready bf16 weight matrices + fused (2, N) scale/shift with the
    conv bias folded into the BatchNorm shift (one-time prep)."""
    prep = {}
    for name, cin, cout, k, _s, has_bn, _a in ENC_CFG:
        w, b = p[name]["w"], p[name]["b"]
        if has_bn:
            scale, shift = p[name + "_bn"]["scale"], p[name + "_bn"]["shift"]
        else:
            scale = jnp.ones((cout,), jnp.float32)
            shift = jnp.zeros((cout,), jnp.float32)
        w_mat = jnp.transpose(w, (2, 3, 1, 0)).reshape(k * k * cin, cout)
        prep[name] = {
            "w": w_mat.astype(jnp.bfloat16),
            "ss": jnp.stack([scale, scale * b + shift]).astype(jnp.float32),
        }
    for name, cin, cout, k, s, has_bn, _a in DEC_CFG:
        w, b = p[name]["w"], p[name]["b"]
        if has_bn:
            scale, shift = p[name + "_bn"]["scale"], p[name + "_bn"]["shift"]
        else:
            scale = jnp.ones((cout,), jnp.float32)
            shift = jnp.zeros((cout,), jnp.float32)
        s2 = s * s
        prep[name] = {
            "w": _pack_convT_weight(w, k, s),
            "ss": jnp.stack([jnp.tile(scale, s2),
                             jnp.tile(scale * b + shift, s2)]
                            ).astype(jnp.float32),
        }
    return prep


# ----------------------------------------------------------------------------
# Forward passes
# ----------------------------------------------------------------------------
def encoder_forward(prep, x):                      # x: NHWC
    for name, _ci, _co, k, s, _bn, act in ENC_CFG:
        x = conv_forward(x, prep[name]["w"], prep[name]["ss"], k, s, act)
    return x


def decoder_forward(prep, x):                      # x: NHWC
    last = len(DEC_CFG) - 1
    for li, (name, _ci, co, k, s, _bn, act) in enumerate(DEC_CFG):
        od = jnp.float32 if li == last else jnp.bfloat16
        x = convT_forward(x, prep[name]["w"], prep[name]["ss"],
                          k, s, co, act, od)
    return x


@jax.jit
def encoder_decoder_forward(prep, x_nchw):
    x = jnp.transpose(x_nchw, (0, 2, 3, 1)).astype(jnp.float32)  # NCHW -> NHWC
    x = encoder_forward(prep, x)
    x = decoder_forward(prep, x)
    return jnp.transpose(x, (0, 3, 1, 2))                        # NHWC -> NCHW


# ----------------------------------------------------------------------------
# Small numerical self-check of the packed ConvTranspose path
# ----------------------------------------------------------------------------
def _ref_conv_transpose_relu(x, w, bias, stride):
    """Naive NHWC ConvTranspose2d (PyTorch semantics, no padding) + bias+relu."""
    bsz, h, wdt, _ = x.shape
    _, co, k, _ = w.shape
    ho = (h - 1) * stride + k
    wo = (wdt - 1) * stride + k
    out = np.zeros((bsz, ho, wo, co), np.float32)
    for i in range(h):
        for j in range(wdt):
            contrib = np.einsum("bc,cokl->bklo", x[:, i, j, :], w)
            out[:, i * stride:i * stride + k, j * stride:j * stride + k, :] += contrib
    return np.maximum(out + bias, 0.0)


def _self_test_convT():
    key = jax.random.PRNGKey(1)
    k1, k2, k3 = jax.random.split(key, 3)
    bsz, h, wdt, ci, co, k, s = 2, 4, 6, 5, 7, 3, 2
    x = jax.random.normal(k1, (bsz, h, wdt, ci), jnp.float32)
    w = jax.random.normal(k2, (ci, co, k, k), jnp.float32) / np.sqrt(ci * k * k)
    bias = 0.1 * jax.random.normal(k3, (co,), jnp.float32)
    w_mat = _pack_convT_weight(w, k, s)
    ss = jnp.stack([jnp.tile(jnp.ones((co,), jnp.float32), s * s),
                    jnp.tile(bias, s * s)]).astype(jnp.float32)
    y = convT_forward(x, w_mat, ss, k, s, co, "relu", jnp.float32)
    y = np.asarray(jax.block_until_ready(y))
    ref = _ref_conv_transpose_relu(np.asarray(x), np.asarray(w),
                                   np.asarray(bias), s)
    err = float(np.max(np.abs(y - ref) / (1.0 + np.abs(ref))))
    assert err < 5e-2, f"convT self-test failed: max rel err {err}"


# ----------------------------------------------------------------------------
if __name__ == "__main__":
    _self_test_convT()

    # NOTE: 256x256 is the *minimum* spatial size this architecture admits
    # (six stride-2 valid convs + one k=3 stride-1 conv must leave >= 1 px);
    # batch is kept at 1 so the example stays small.
    params = init_params(seed=0)
    prep = prepare_params(params)
    x = jax.random.normal(jax.random.PRNGKey(0), (1, 3, 256, 256), jnp.float32)

    out = encoder_decoder_forward(prep, x)
    out = jax.block_until_ready(out)

    assert out.shape == (1, 3, 256, 256), out.shape
    assert bool(jnp.all(jnp.isfinite(out)))
    assert bool(jnp.all((out >= 0.0) & (out <= 1.0)))  # sigmoid output range
    print("KERNEL_OK")
</pallas_src>

<mosaic_0001>
module attributes {stable_mosaic.version = 11 : i64} {
  func.func @_gemm_bn_act_kernel(%arg0: i32, %arg1: i32, %arg2: memref<48x20xbf16, #tpu.memory_space<vmem>>, %arg3: memref<20x28xbf16, #tpu.memory_space<vmem>>, %arg4: memref<2x28xf32, #tpu.memory_space<vmem>>, %arg5: memref<48x28xf32, #tpu.memory_space<vmem>>) attributes {dimension_semantics = [#tpu.dimension_semantics<parallel>, #tpu.dimension_semantics<parallel>], iteration_bounds = array<i64: 2, 1>, scalar_prefetch = 0 : i64, scratch_operands = 0 : i64, tpu.core_type = #tpu.core_type<tc>, window_params = [{transform_indices = @transform_0, window_bounds = array<i64: 48, 20>}, {transform_indices = @transform_1, window_bounds = array<i64: 20, 28>}, {transform_indices = @transform_2, window_bounds = array<i64: 2, 28>}, {transform_indices = @transform_3, window_bounds = array<i64: 48, 28>}]} {
    %c0 = arith.constant 0 : index
    %c0_0 = arith.constant 0 : index
    %0 = vector.load %arg2[%c0, %c0_0] : memref<48x20xbf16, #tpu.memory_space<vmem>>, vector<48x20xbf16>
    %c0_1 = arith.constant 0 : index
    %c0_2 = arith.constant 0 : index
    %1 = vector.load %arg3[%c0_1, %c0_2] : memref<20x28xbf16, #tpu.memory_space<vmem>>, vector<20x28xbf16>
    %cst = arith.constant dense<0.000000e+00> : vector<48x28xf32>
    %2 = tpu.matmul %0, %1, %cst {dimension_numbers = #tpu.dot_dimension_numbers<[1], [0], [0], [1], [0, 0, 1, 1], [], []>} : vector<48x20xbf16>, vector<20x28xbf16>, vector<48x28xf32> -> vector<48x28xf32>
    %c0_3 = arith.constant 0 : index
    %c0_4 = arith.constant 0 : index
    %3 = vector.load %arg4[%c0_3, %c0_4] : memref<2x28xf32, #tpu.memory_space<vmem>>, vector<1x28xf32>
    %4 = vector.broadcast %3 : vector<1x28xf32> to vector<48x28xf32>
    %5 = arith.mulf %2, %4 : vector<48x28xf32>
    %c1 = arith.constant 1 : index
    %c0_5 = arith.constant 0 : index
    %6 = vector.load %arg4[%c1, %c0_5] : memref<2x28xf32, #tpu.memory_space<vmem>>, vector<1x28xf32>
    %7 = vector.broadcast %6 : vector<1x28xf32> to vector<48x28xf32>
    %8 = arith.addf %5, %7 : vector<48x28xf32>
    %cst_6 = arith.constant 0.000000e+00 : f32
    %9 = vector.broadcast %cst_6 : f32 to vector<48x28xf32>
    %10 = arith.maximumf %8, %9 : vector<48x28xf32>
    %c0_7 = arith.constant 0 : index
    %c0_8 = arith.constant 0 : index
    %11 = vector.load %arg5[%c0_7, %c0_8] : memref<48x28xf32, #tpu.memory_space<vmem>>, vector<48x28xf32>
    tpu.vector_store %arg5[%c0_7, %c0_8], %10 {strides = array<i32>} : memref<48x28xf32, #tpu.memory_space<vmem>>, vector<48x28xf32>,
    return
  }
  func.func @transform_0(%arg0: i32, %arg1: i32) -> (i32, i32) {
    %c0_i32 = arith.constant 0 : i32
    %c0_i32_0 = arith.constant 0 : i32
    return %arg0, %c0_i32 : i32, i32
  }
  func.func @transform_1(%arg0: i32, %arg1: i32) -> (i32, i32) {
    %c0_i32 = arith.constant 0 : i32
    %c0_i32_0 = arith.constant 0 : i32
    return %c0_i32, %arg1 : i32, i32
  }
  func.func @transform_2(%arg0: i32, %arg1: i32) -> (i32, i32) {
    %c0_i32 = arith.constant 0 : i32
    %c0_i32_0 = arith.constant 0 : i32
    return %c0_i32, %arg1 : i32, i32
  }
  func.func @transform_3(%arg0: i32, %arg1: i32) -> (i32, i32) {
    %c0_i32 = arith.constant 0 : i32
    return %arg0, %arg1 : i32, i32
  }
}

</mosaic_0001>

<bundles_post_ra>
// kernel: tpu_custom_call.1
= control target key start
LH: loop header
LB: loop body
LE: loop exit
PB: predicated region body
PF: predicated region fallthrough
CT: control target
= control target key end

     0   :  { %s596_s12 = smov 0   ;;  %s598_s13 = smov 0   ;;  %s647_s0 = inlined_call_operand.vmem [shape: bf16[96,20], index: 0, kind: input, shape index: {}]   ;;  %s648_s1 = inlined_call_operand.vmem [shape: bf16[20,28], index: 1, kind: input, shape index: {}]   ;;  %s649_s2 = inlined_call_operand.vmem [shape: f32[2,28], index: 2, kind: input, shape index: {}]   ;;  %s650_s3 = inlined_call_operand.vmem [shape: f32[96,28], index: 3, kind: output, shape index: {}]  }
   0x1   :  { %s600_s14 = smov 0  }
   0x2 LB: > { %s25_s15 = sadd.s32 1, %s568_s13  ;;  %p479_p0 = scmp.ge.s32.totalorder %s572_s14, 1  ;;  %s572_s14 = sphi %s600_s14, %s13_s14   ;;  %s568_s13 = sphi %s598_s13, %s652_s13   ;;  %s564_s12 = sphi %s596_s12, %s651_s12  }
   0x3   : > { %p27_p1 = scmp.ge.s32.totalorder %s25_s15, 2  ;;  %p170_p2 = scmp.lt.s32.totalorder %s572_s14, 3 }
   0x5   : > { %s654_s15 = smov (%p27_p1, %s25_s15), 0  ;;  %p171_p3 = pnand %p479_p0, %p170_p2 }
   0x6   : > { %v545_v0 = vld [vmem:[%s648_s1] sm:$0xff] (!%p171_p3)   ;;  %v574_v1 = vmov (!%p171_p3), 0.0   ;;  %v546_v2 = vld [vmem:[%s648_s1 + $0x8] ss:$0 sps:$4 sm:$0x33] (!%p171_p3)   ;;  %vm272_vm0 = vcmask (!%p171_p3), 1041408  }
   0x7   : > { %174 = sbr.rel (%p171_p3) target bundleno = 247 (0xf7), region = 32  ;;  %515 = vmatprep.subr.bf16.mxu1 (!%p171_p3), %v574_v1  ;;  %499 = vmatprep.subr.bf16.mxu0 (!%p171_p3), %v574_v1  ;;  %v274_v3 = vsel (!%p171_p3), %vm272_vm0, %v546_v2, 0  ;;  %vm575_vm1 = vmmov (!%p171_p3), 0   ;;  %vm262_vm2 = vcmask (!%p171_p3), 162816   ;;  %v490_v7 = vld [vmem:[%s649_s2] ss:$0 sm:$0xff] (!%p171_p3) }
   0x8   : > { %517 = vmatpush3.bf16.msra.mxu1 (!%p171_p3), %v545_v0  ;;  %500 = vmatpush3.bf16.msra.mxu0 (!%p171_p3), %v545_v0  ;;  %s205_s20 = smul.u32 (!%p171_p3), 6, %s564_s12  ;;  %v491_v9 = vld [vmem:[%s649_s2 + $0x1] ss:$0 sm:$0xff] (!%p171_p3)  ;;  %vm361_vm3 = vcmask (!%p171_p3), 228352  }
   0x9   : > { %516 = vmatprep.subr.bf16.mxu1 (!%p171_p3), %v574_v1  ;;  %507 = vmatprep.mubr.msk.bf16.mxu1 (!%p171_p3), %vm575_vm1, %v574_v1 }
   0xa   : > { %p206_p4 = scmp.lt.s32.totalorder (!%p171_p3), %s205_s20, 11  ;;  %501 = vmatprep.subr.bf16.mxu0 (!%p171_p3), %v574_v1  ;;  %503 = vmatprep.mubr.msk.bf16.mxu0 (!%p171_p3), %vm575_vm1, %v574_v1 }
   0xc   : > { %518 = vmatpush3.bf16.msra.mxu1 (!%p171_p3), %v274_v3  ;;  %502 = vmatpush3.bf16.msra.mxu0 (!%p171_p3), %v274_v3 }
   0xe   : > { %s656_s20 = smov (!%p206_p4, %s205_s20), 11 }
   0xf   : > { %s480_s21 = sshll.u32 %s656_s20, 2  ;;  %s481_s29 = sshll.u32 %s656_s20, 3 }
  0x10   : > { %s209_s24 = scalar_lea.vmem %s647_s0, %s480_s21  ;;  %s226_s5 = scalar_lea.vmem %s650_s3, %s481_s29 }
  0x11   : > { %v547_v4 = vld [vmem:[%s209_s24 + $0x8] sm:$0xff]   ;;  %v548_v5 = vld [vmem:[%s209_s24] sm:$0xff]   ;;  %v549_v6 = vld [vmem:[%s209_s24 + $0x10] sm:$0xff]  }
  0x12   : > { %508 = vmatmul.mubr.msk.bf16.vlgmr.msra.gmra.mrb[0].mxu1 %vm262_vm2, %v547_v4  ;;  %504 = vmatmul.mubr.msk.bf16.vlgmr.msra.gmra.mrb[0].mxu0 %vm262_vm2, %v548_v5 }
  0x13   : > { %511 = vmatprep.mubr.msk.bf16.mxu1 %vm575_vm1, %v574_v1 }
  0x1a   : > { %512 = vmatmul.mubr.msk.bf16.gmra.mrb[4].mxu1 %vm262_vm2, %v549_v6 }
  0xe5   : > { %v318_v8 = vpop.f32.mrb[0].mxu1  ;;  %v310_v12 = vpop.f32.mrb[0].mxu0 }
  0xe6   : > { %v340_v10 = vmul.f32 %v490_v7, %v318_v8  ;;  %v509_v11 = vpop.f32.mrb[1].mxu1  ;;  %v338_v14 = vmul.f32 %v490_v7, %v310_v12  ;;  %v505_v15 = vpop.f32.mrb[1].mxu0 }
  0xe7   : > { %v321_v13 = vpop.f32.mrb[2].mxu1  ;;  %v313_v19 = vpop.f32.mrb[2].mxu0 }
  0xe8   : > { %v351_v16 = vadd.f32 %v491_v9, %v340_v10  ;;  %v341_v17 = vmul.f32 %v490_v7, %v321_v13  ;;  %v510_v18 = vpop.f32.mrb[3].mxu1  ;;  %v349_v20 = vadd.f32 %v491_v9, %v338_v14  ;;  %v339_v21 = vmul.f32 %v490_v7, %v313_v19  ;;  %v506_v22 = vpop.f32.mrb[3].mxu0 }
  0xea   : > { %v357_v23 = vmax.f32 %v351_v16, 0.0  ;;  %v352_v24 = vadd.f32 %v491_v9, %v341_v17  ;;  %v355_v25 = vmax.f32 %v349_v20, 0.0  ;;  %v350_v26 = vadd.f32 %v491_v9, %v339_v21 }
  0xec   : > { %364 = vst.msk [vmem:[%s226_s5 + $0x10] sm:$0xff] %vm361_vm3, %v357_v23  ;;  %v358_v27 = vmax.f32 %v352_v24, 0.0  ;;  %362 = vst.msk [vmem:[%s226_s5] sm:$0xff] %vm361_vm3, %v355_v25  ;;  %v356_v28 = vmax.f32 %v350_v26, 0.0 }
  0xed   : > { %v326_v29 = vpop.f32.mrb[4].mxu1 }
  0xee   : > { %365 = vst.msk [vmem:[%s226_s5 + $0x18] sm:$0xff] %vm361_vm3, %v358_v27  ;;  %v342_v30 = vmul.f32 %v490_v7, %v326_v29  ;;  %v513_v31 = vpop.f32.mrb[5].mxu1  ;;  %363 = vst.msk [vmem:[%s226_s5 + $0x8] sm:$0xff] %vm361_vm3, %v356_v28 }
  0xef   : > { %v329_v32 = vpop.f32.mrb[6].mxu1 }
  0xf0   : > { %v353_v33 = vadd.f32 %v491_v9, %v342_v30  ;;  %v343_v34 = vmul.f32 %v490_v7, %v329_v32  ;;  %v514_v35 = vpop.f32.mrb[7].mxu1 }
  0xf2   : > { %v359_v36 = vmax.f32 %v353_v33, 0.0  ;;  %v354_v37 = vadd.f32 %v491_v9, %v343_v34 }
  0xf4   : > { %366 = vst.msk [vmem:[%s226_s5 + $0x20] sm:$0xff] %vm361_vm3, %v359_v36  ;;  %v360_v38 = vmax.f32 %v354_v37, 0.0 }
  0xf6   : > { %367 = vst.msk [vmem:[%s226_s5 + $0x28] sm:$0xff] %vm361_vm3, %v360_v38 }
  0xf7 PF: > { %s13_s14 = sadd.s32 1, %s572_s14   ;;  %s651_s12 = smov %s568_s13 }
  0xf8   : > { %p10_p5 = scmp.ge.s32.totalorder %s13_s14, 4   ;;  %s652_s13 = smov %s654_s15 }
  0xfa   :  { %12 = sbr.rel (!%p10_p5) target bundleno = 2 (0x2), region = 68 }

</bundles_post_ra>
